<compile_context>
chip_gen: v7x
topology: tpu7x:2x2x1
jax: 0.10.0
libtpu: 0.0.40
codegen_flags: <defaults>
</compile_context>

<pallas_src>
import jax
import jax.numpy as jnp
from jax.experimental import pallas as pl
from jax.experimental.pallas import tpu as pltpu

# Static problem sizes implied by the PyTorch module / its input x1 = randn(1, 2, 3)
C_IN, C_OUT, K, L = 2, 5, 2, 3
OUT_PAD = 1                          # ConvTranspose1d(..., output_padding=1)
L_OUT = (L - 1) * 1 + K + OUT_PAD    # = 5 (stride=1, padding=0)
F_OUT = 7

NT = C_IN * L                        # 6 input elements -> 6 affine-operator bands
LANES = 128
BAND = 8                             # sublane-aligned band height
SLAB_ROWS = BAND * (NT + 1)          # 6 M-bands + 1 fused-bias band = 56 rows


def _model_kernel(x_ref, p_ref, o_ref):
    """out[b] = bias_band + sum_t x[b, t] * M_band_t   (6 VPU scalar-broadcast MACs, no MXU)."""
    b = pl.program_id(0)
    base = b * NT
    acc = p_ref[NT * BAND:(NT + 1) * BAND, :]                 # fused-bias band, (8, 128)
    for t in range(NT):                                       # static -> fully unrolled
        acc = acc + x_ref[base + t] * p_ref[t * BAND:(t + 1) * BAND, :]
    o_ref[0] = acc[:C_OUT, :F_OUT]                            # masked store of the valid (5, 7) corner


def pack_params(conv_w, conv_b, fc_w, fc_b):
    """Fold conv/fc weights, both biases and the -0.154 constant into one (56, 128) f32 slab.

    Band t = i*L + j (rows t*8 : t*8+C_OUT, lanes 0:F_OUT) holds
        M_{i,j}[c, f] = sum_k conv_w[i, c, k] * fc_w[f, j + k]
    Band NT holds the fused bias
        (conv_b[c] - 0.154) * sum_l fc_w[f, l] + fc_b[f]
    (the -0.154 / conv bias hit every conv column, including the output_padding one, hence the full
     column-sum of fc_w.T). All padding rows/lanes are zero.
    """
    wfc_t = fc_w.T.astype(jnp.float32)                        # (L_OUT, F_OUT)
    conv_w = conv_w.astype(jnp.float32)
    slab = jnp.zeros((SLAB_ROWS, LANES), jnp.float32)
    for i in range(C_IN):
        for j in range(L):
            m = jnp.zeros((C_OUT, F_OUT), jnp.float32)
            for k in range(K):
                m = m + conv_w[i, :, k][:, None] * wfc_t[j + k][None, :]
            t = i * L + j
            slab = slab.at[t * BAND:t * BAND + C_OUT, 0:F_OUT].set(m)
    fused_bias = ((conv_b.astype(jnp.float32) - jnp.float32(0.154))[:, None]
                  * jnp.sum(wfc_t, axis=0)[None, :]
                  + fc_b.astype(jnp.float32)[None, :])        # (C_OUT, F_OUT)
    slab = slab.at[NT * BAND:NT * BAND + C_OUT, 0:F_OUT].set(fused_bias)
    return slab


def model_forward(x, param_slab):
    """x: (B, C_IN, L) f32; param_slab: output of pack_params(). Returns (B, C_OUT, F_OUT)."""
    B = x.shape[0]
    x_flat = x.astype(jnp.float32).reshape(B * NT)            # row-major: index = b*NT + i*L + j
    return pl.pallas_call(
        _model_kernel,
        out_shape=jax.ShapeDtypeStruct((B, C_OUT, F_OUT), jnp.float32),
        grid=(B,),
        in_specs=[
            pl.BlockSpec(memory_space=pltpu.MemorySpace.SMEM),      # x scalars live in SMEM
            pl.BlockSpec((SLAB_ROWS, LANES), lambda b: (0, 0)),     # grid-invariant param slab
        ],
        out_specs=pl.BlockSpec((1, C_OUT, F_OUT), lambda b: (b, 0, 0)),
        compiler_params=pltpu.CompilerParams(dimension_semantics=("parallel",)),
    )(x_flat, param_slab)


def _reference_forward(x, conv_w, conv_b, fc_w, fc_b):
    """Pure-JAX reference of the PyTorch forward (unfused math) for a single sample (1, C_IN, L)."""
    x2d = x[0].astype(jnp.float32)
    y = jnp.zeros((C_OUT, L_OUT), jnp.float32)
    for k in range(K):
        y = y.at[:, k:k + L].add(conv_w[:, :, k].T @ x2d)
    y = y + conv_b[:, None]
    v2 = y - 0.154
    v3 = v2 @ fc_w.T + fc_b
    return v3[None]


if __name__ == "__main__":
    key = jax.random.PRNGKey(0)
    kx, kw1, kb1, kw2, kb2, kxb = jax.random.split(key, 6)

    # Deterministic synthetic parameters (shapes from the module's __init__ / its input)
    x = jax.random.normal(kx, (1, C_IN, L), dtype=jnp.float32)
    conv_w = jax.random.normal(kw1, (C_IN, C_OUT, K), dtype=jnp.float32) * 0.5
    conv_b = jax.random.normal(kb1, (C_OUT,), dtype=jnp.float32) * 0.1
    fc_w = jax.random.normal(kw2, (F_OUT, L_OUT), dtype=jnp.float32) * 0.5
    fc_b = jax.random.normal(kb2, (F_OUT,), dtype=jnp.float32) * 0.1

    slab = pack_params(conv_w, conv_b, fc_w, fc_b)            # done once; reusable across calls

    # Spec-shaped call (batch = 1, matching x1 = randn(1, 2, 3))
    out = jax.block_until_ready(model_forward(x, slab))
    ref = _reference_forward(x, conv_w, conv_b, fc_w, fc_b)
    assert out.shape == (1, C_OUT, F_OUT), out.shape
    assert jnp.allclose(out, ref, atol=1e-5, rtol=1e-5), (out, ref)

    # Batched sanity check: one pallas_call with a "parallel" batch grid axis (not a per-sample loop)
    xb = jax.random.normal(kxb, (3, C_IN, L), dtype=jnp.float32)
    outb = jax.block_until_ready(model_forward(xb, slab))
    refb = jnp.concatenate(
        [_reference_forward(xb[i:i + 1], conv_w, conv_b, fc_w, fc_b) for i in range(3)], axis=0)
    assert outb.shape == (3, C_OUT, F_OUT), outb.shape
    assert jnp.allclose(outb, refb, atol=1e-5, rtol=1e-5), (outb, refb)

    print("KERNEL_OK")
</pallas_src>

<mosaic_0001>
module attributes {stable_mosaic.version = 11 : i64} {
  func.func @_model_kernel(%arg0: i32, %arg1: memref<6xf32, #tpu.memory_space<smem>>, %arg2: memref<56x128xf32, #tpu.memory_space<vmem>>, %arg3: memref<1x5x7xf32, #tpu.memory_space<vmem>>) attributes {dimension_semantics = [#tpu.dimension_semantics<parallel>], iteration_bounds = array<i64: 1>, scalar_prefetch = 0 : i64, scratch_operands = 0 : i64, tpu.core_type = #tpu.core_type<tc>, window_params = [{transform_indices = @transform_0, window_bounds = array<i64: 6>}, {pipeline_mode = #tpu.pipeline_mode<synchronous>, transform_indices = @transform_1, window_bounds = array<i64: 56, 128>}, {transform_indices = @transform_2, window_bounds = array<i64: 1, 5, 7>}]} {
    %c6_i32 = arith.constant 6 : i32
    %0 = arith.muli %arg0, %c6_i32 : i32
    %c48 = arith.constant 48 : index
    %c0 = arith.constant 0 : index
    %1 = vector.load %arg2[%c48, %c0] : memref<56x128xf32, #tpu.memory_space<vmem>>, vector<8x128xf32>
    %c0_i32 = arith.constant 0 : i32
    %2 = arith.addi %0, %c0_i32 : i32
    %3 = arith.index_cast %2 : i32 to index
    %4 = memref.load %arg1[%3] : memref<6xf32, #tpu.memory_space<smem>>
    %c0_0 = arith.constant 0 : index
    %c0_1 = arith.constant 0 : index
    %5 = vector.load %arg2[%c0_0, %c0_1] : memref<56x128xf32, #tpu.memory_space<vmem>>, vector<8x128xf32>
    %6 = vector.broadcast %4 : f32 to vector<8x128xf32>
    %7 = arith.mulf %6, %5 : vector<8x128xf32>
    %8 = arith.addf %1, %7 : vector<8x128xf32>
    %c1_i32 = arith.constant 1 : i32
    %9 = arith.addi %0, %c1_i32 : i32
    %10 = arith.index_cast %9 : i32 to index
    %11 = memref.load %arg1[%10] : memref<6xf32, #tpu.memory_space<smem>>
    %c8 = arith.constant 8 : index
    %c0_2 = arith.constant 0 : index
    %12 = vector.load %arg2[%c8, %c0_2] : memref<56x128xf32, #tpu.memory_space<vmem>>, vector<8x128xf32>
    %13 = vector.broadcast %11 : f32 to vector<8x128xf32>
    %14 = arith.mulf %13, %12 : vector<8x128xf32>
    %15 = arith.addf %8, %14 : vector<8x128xf32>
    %c2_i32 = arith.constant 2 : i32
    %16 = arith.addi %0, %c2_i32 : i32
    %17 = arith.index_cast %16 : i32 to index
    %18 = memref.load %arg1[%17] : memref<6xf32, #tpu.memory_space<smem>>
    %c16 = arith.constant 16 : index
    %c0_3 = arith.constant 0 : index
    %19 = vector.load %arg2[%c16, %c0_3] : memref<56x128xf32, #tpu.memory_space<vmem>>, vector<8x128xf32>
    %20 = vector.broadcast %18 : f32 to vector<8x128xf32>
    %21 = arith.mulf %20, %19 : vector<8x128xf32>
    %22 = arith.addf %15, %21 : vector<8x128xf32>
    %c3_i32 = arith.constant 3 : i32
    %23 = arith.addi %0, %c3_i32 : i32
    %24 = arith.index_cast %23 : i32 to index
    %25 = memref.load %arg1[%24] : memref<6xf32, #tpu.memory_space<smem>>
    %c24 = arith.constant 24 : index
    %c0_4 = arith.constant 0 : index
    %26 = vector.load %arg2[%c24, %c0_4] : memref<56x128xf32, #tpu.memory_space<vmem>>, vector<8x128xf32>
    %27 = vector.broadcast %25 : f32 to vector<8x128xf32>
    %28 = arith.mulf %27, %26 : vector<8x128xf32>
    %29 = arith.addf %22, %28 : vector<8x128xf32>
    %c4_i32 = arith.constant 4 : i32
    %30 = arith.addi %0, %c4_i32 : i32
    %31 = arith.index_cast %30 : i32 to index
    %32 = memref.load %arg1[%31] : memref<6xf32, #tpu.memory_space<smem>>
    %c32 = arith.constant 32 : index
    %c0_5 = arith.constant 0 : index
    %33 = vector.load %arg2[%c32, %c0_5] : memref<56x128xf32, #tpu.memory_space<vmem>>, vector<8x128xf32>
    %34 = vector.broadcast %32 : f32 to vector<8x128xf32>
    %35 = arith.mulf %34, %33 : vector<8x128xf32>
    %36 = arith.addf %29, %35 : vector<8x128xf32>
    %c5_i32 = arith.constant 5 : i32
    %37 = arith.addi %0, %c5_i32 : i32
    %38 = arith.index_cast %37 : i32 to index
    %39 = memref.load %arg1[%38] : memref<6xf32, #tpu.memory_space<smem>>
    %c40 = arith.constant 40 : index
    %c0_6 = arith.constant 0 : index
    %40 = vector.load %arg2[%c40, %c0_6] : memref<56x128xf32, #tpu.memory_space<vmem>>, vector<8x128xf32>
    %41 = vector.broadcast %39 : f32 to vector<8x128xf32>
    %42 = arith.mulf %41, %40 : vector<8x128xf32>
    %43 = arith.addf %36, %42 : vector<8x128xf32>
    %44 = vector.extract_strided_slice %43 {offsets = [0, 0], sizes = [5, 7], strides = [1, 1]} : vector<8x128xf32> to vector<5x7xf32>
    %c0_7 = arith.constant 0 : index
    %c0_8 = arith.constant 0 : index
    %c0_9 = arith.constant 0 : index
    %45 = vector.load %arg3[%c0_7, %c0_8, %c0_9] : memref<1x5x7xf32, #tpu.memory_space<vmem>>, vector<1x5x7xf32>
    %46 = vector.shape_cast %45 : vector<1x5x7xf32> to vector<5x7xf32>
    %47 = vector.shape_cast %44 : vector<5x7xf32> to vector<1x5x7xf32>
    tpu.vector_store %arg3[%c0_7, %c0_8, %c0_9], %47 {strides = array<i32>} : memref<1x5x7xf32, #tpu.memory_space<vmem>>, vector<1x5x7xf32>,
    return
  }
  func.func @transform_0(%arg0: i32) -> i32 {
    %c0_i32 = arith.constant 0 : i32
    %c0_i32_0 = arith.constant 0 : i32
    return %c0_i32 : i32
  }
  func.func @transform_1(%arg0: i32) -> (i32, i32) {
    %c0_i32 = arith.constant 0 : i32
    %c0_i32_0 = arith.constant 0 : i32
    %c0_i32_1 = arith.constant 0 : i32
    return %c0_i32, %c0_i32_0 : i32, i32
  }
  func.func @transform_2(%arg0: i32) -> (i32, i32, i32) {
    %c0_i32 = arith.constant 0 : i32
    %c0_i32_0 = arith.constant 0 : i32
    %c0_i32_1 = arith.constant 0 : i32
    return %arg0, %c0_i32, %c0_i32_0 : i32, i32, i32
  }
}

</mosaic_0001>

<bundles_post_ra>
// kernel: tpu_custom_call.1
= control target key start
LH: loop header
LB: loop body
LE: loop exit
PB: predicated region body
PF: predicated region fallthrough
CT: control target
= control target key end

     0   :  { %7 = vsyncpa [#allocation4], 0  ;;  %s172_s0 = inlined_call_operand.hbm [shape: f32[6], index: 0, kind: input, shape index: {}]   ;;  %s173_s1 = inlined_call_operand.hbm [shape: f32[56,128], index: 1, kind: input, shape index: {}]   ;;  %s174_s2 = inlined_call_operand.vmem [shape: f32[1,5,7], index: 2, kind: output, shape index: {}]  }
   0x1   :  { %8 = vsyncpa [#allocation3], 0  ;;  %s90_s11 = scalar_lea.hbm %s172_s0, 16 }
   0x2   :  { %p91_p0 = scmp.ne.s32.totalorder %s172_s0, %s90_s11  ;;  %p94_p1 = scmp.lt.u32.totalorder %s90_s11, %s172_s0 }
   0x4   :  { %p96_p2 = pnand %p94_p1, %p91_p0 }
   0x6   :  { %99 = shalt.err (!%p96_p2)
}
   0x7   :  { %s126_s16 = smov [#allocation2]   ;;  %s127_s19 = smov [#allocation5]  }
   0x8   :  { %16 = dma.hbm_to_smem %s172_s0, 16, %s126_s16, [#allocation4]  }
   0x9   :  { %s22_s20 = sshll.u32 %s127_s19, 4  ;;  %s100_s23 = scalar_lea.hbm %s173_s1, 896  ;;  %s23_s20 = int_to_ptr.vmem [resolvable:$true] %s22_s20 }
   0xa   :  { %p101_p3 = scmp.ne.s32.totalorder %s173_s1, %s100_s23  ;;  %p104_p4 = scmp.lt.u32.totalorder %s100_s23, %s173_s1 }
   0xc   :  { %p106_p5 = pnand %p104_p4, %p101_p3 }
   0xe   :  { %109 = shalt.err (!%p106_p5)
}
   0xf   :  { %s110_s28 = scalar_lea.vmem %s23_s20, 896  ;;  %p115_p7 = scmp.lt.s32.totalorder %s23_s20, %s23_s20 }
  0x10   :  { %p111_p6 = scmp.ne.s32.totalorder %s23_s20, %s110_s28  ;;  %p116_p8 = scmp.lt.s32.totalorder %s110_s28, %s110_s28 }
  0x12   :  { %p117_p9 = por %p116_p8, %p115_p7 }
  0x14   :  { %p118_p10 = pnand %p117_p9, %p111_p6 }
  0x16   :  { %121 = shalt.err (!%p118_p10)
}
  0x17   :  { %s128_s0 = smov 128   ;;  %s129_s29 = smov 8  }
  0x18   :  { %28 = dma.hbm_to_vmem [thread:$0]  %s173_s1, 896, %s23_s20, [#allocation3], %s128_s0, %s128_s0, %s129_s29  }
  0x19   :  { %122 = dma.done.wait [#allocation4], 16  }
  0x1a   :  { %123 = vsyncadd [#allocation4], 4294967280 }
  0x1b   :  { %124 = dma.done.wait [#allocation3], 896  }
  0x1c   :  { %125 = vsyncadd [#allocation3], 4294966400 }
  0x1d   :  { %35 = sfence }
  0x1e   :  { %s38_s4 = sld [smem:[#allocation2]]  ;;  %s81_s5 = sld [smem:[#allocation2 + $0x1]]  ;;  %v39_v0 = vld [vmem:[#allocation5] sm:$0xff]  ;;  %v45_v1 = vld [vmem:[#allocation5 + $0x8] sm:$0xff]  ;;  %v37_v2 = vld [vmem:[#allocation5 + $0x30] sm:$0xff]  ;;  %vm73_vm0 = vcmask 53248  }
  0x1f   :  { %s82_s6 = sld [smem:[#allocation2 + $0x2]]  ;;  %s83_s7 = sld [smem:[#allocation2 + $0x3]]  ;;  %v51_v5 = vld [vmem:[#allocation5 + $0x10] sm:$0xff]  ;;  %v57_v9 = vld [vmem:[#allocation5 + $0x18] sm:$0xff]  ;;  %v63_v13 = vld [vmem:[#allocation5 + $0x20] sm:$0xff] }
  0x20   :  { %s84_s8 = sld [smem:[#allocation2 + $0x4]]  ;;  %s85_s9 = sld [smem:[#allocation2 + $0x5]]  ;;  %v69_v17 = vld [vmem:[#allocation5 + $0x28] sm:$0xff] }
  0x24   :  { %v40_v3 = vstv %s38_s4  ;;  %v46_v4 = vstv %s81_s5 }
  0x25   :  { %v41_v6 = vmul.f32 %v40_v3, %v39_v0  ;;  %v47_v7 = vmul.f32 %v46_v4, %v45_v1  ;;  %v52_v8 = vstv %s82_s6  ;;  %v58_v10 = vstv %s83_s7 }
  0x26   :  { %v53_v12 = vmul.f32 %v52_v8, %v51_v5  ;;  %v64_v14 = vstv %s84_s8  ;;  %v59_v16 = vmul.f32 %v58_v10, %v57_v9  ;;  %v70_v18 = vstv %s85_s9 }
  0x27   :  { %v42_v11 = vadd.f32 %v41_v6, %v37_v2  ;;  %v65_v20 = vmul.f32 %v64_v14, %v63_v13  ;;  %v71_v22 = vmul.f32 %v70_v18, %v69_v17 }
  0x29   :  { %v48_v15 = vadd.f32 %v47_v7, %v42_v11 }
  0x2b   :  { %v54_v19 = vadd.f32 %v53_v12, %v48_v15 }
  0x2d   :  { %v60_v21 = vadd.f32 %v59_v16, %v54_v19 }
  0x2f   :  { %v66_v23 = vadd.f32 %v65_v20, %v60_v21 }
  0x31   :  { %v72_v24 = vadd.f32 %v71_v22, %v66_v23 }
  0x33   :  { %74 = vst.msk [vmem:[%s174_s2] sm:$0x1f] %vm73_vm0, %v72_v24 }
  0x34   :  { %79 = vsyncpa [#allocation3], 1 }
  0x35   :  { %80 = vsyncpa [#allocation4], 1 }

</bundles_post_ra>
